<compile_context>
chip_gen: v5e
topology: v5e:2x2
jax: 0.10.0
libtpu: 0.0.40
codegen_flags: <defaults>
</compile_context>

<pallas_src>
import functools

import jax
import jax.numpy as jnp
from jax import lax
from jax.experimental import pallas as pl
from jax.experimental.pallas import tpu as pltpu


def _scalar_block(val):
    """(8,128) f32 block with `val` at [0,0], zeros elsewhere (lane-dense store)."""
    row = lax.broadcasted_iota(jnp.int32, (8, 128), 0)
    col = lax.broadcasted_iota(jnp.int32, (8, 128), 1)
    return jnp.where((row == 0) & (col == 0), val, 0.0).astype(jnp.float32)


def _weight_mse_kernel(t_ref, l_ref, w_ref, out_ref, *, valid_tail_rows, has_tail):
    # t_ref / l_ref : (1, C, TILE_R, L)  input dtype (f32/bf16), upcast in VMEM
    # w_ref         : (1, TILE_R, L)     f32 (K already reduced in the wrapper)
    # out_ref       : (8, 128) f32 partial-sum block, value at [0, 0]
    diff = t_ref[0].astype(jnp.float32) - l_ref[0].astype(jnp.float32)  # (C,R,L)
    mse = jnp.sum(diff * diff, axis=0)                                  # (R,L)
    prod = mse * w_ref[0]                                               # (R,L)

    # Fast path: plain full-tile reduce, no iota/mask work on ordinary tiles.
    out_ref[...] = _scalar_block(jnp.sum(prod))

    if has_tail:
        # Only the very last R-tile is partially out of bounds.  Recompute its
        # partial sum with the padded rows masked off; pl.when keeps the mask
        # cost off every other grid step.  jnp.where *selects* (discards) the
        # undefined out-of-bounds data, so garbage/NaN lanes never propagate.
        @pl.when(pl.program_id(1) == pl.num_programs(1) - 1)
        def _():
            rows = lax.broadcasted_iota(jnp.int32, prod.shape, 0)
            masked = jnp.where(rows < valid_tail_rows, prod, 0.0)
            out_ref[...] = _scalar_block(jnp.sum(masked))


def _vmem_capacity_bytes():
    try:
        return int(pltpu.get_tpu_info().vmem_capacity_bytes)
    except Exception:
        return 64 * 1024 * 1024  # most conservative (v7x per-TC VMEM)


def _per_row_vmem_bytes(c, lanes, in_itemsize):
    # VMEM bytes needed per spatial row of one tile:
    #   target+logit input tiles, double buffered : 2 arrays * 2 bufs * C*L*it
    #   f32 diff / squared-diff intermediates     : ~2 * C*L*4
    #   K-reduced weight tile (f32), double buf.  : 2 * L*4
    return (2 * 2 * c * lanes * in_itemsize
            + 2 * c * lanes * 4
            + 2 * lanes * 4)


def _choose_tile_rows(rows_total, c, lanes, in_itemsize, tile_budget):
    per_row = _per_row_vmem_bytes(c, lanes, in_itemsize)
    max_rows = (tile_budget // per_row) // 8 * 8
    if max_rows < 8:
        return None  # does not fit VMEM even at the minimum tile
    # DMA-efficiency floor: >= ~4 MiB of target+logit bytes per grid step.
    target_step_bytes = 4 * 1024 * 1024
    want_rows = -(-target_step_bytes // (2 * c * lanes * in_itemsize))
    want_rows = -(-want_rows // 8) * 8
    tile = max(8, min(max_rows, want_rows))
    if tile >= rows_total:
        return rows_total  # single full-extent tile: always layout-legal
    # Prefer a nearby multiple-of-8 divisor of rows_total -> no masked tail.
    r = tile
    while r >= max(8, tile // 2):
        if rows_total % r == 0:
            return r
        r -= 8
    return tile


def weight_mse_ref(target, logit, weight):
    mse = jnp.sum((target.astype(jnp.float32) - logit.astype(jnp.float32)) ** 2,
                  axis=1)                                   # (B, X, Y)
    w = jnp.sum(weight, axis=-1, dtype=jnp.float32)         # (B, X, Y)
    B, _, X, Y = target.shape
    return jnp.sqrt(jnp.sum(mse * w) / (B * X * Y))


def weight_mse(target, logit, weight, *, force_pallas=False,
               min_pallas_bytes=8 * 1024 * 1024, tile_rows=None):
    """target, logit: (B,C,X,Y); weight: (B,X,Y,K). Returns scalar f32.

    bf16 target/logit are encouraged for large problems: the kernel upcasts
    per-tile in VMEM, so accuracy is unchanged while HBM reads halve.
    `tile_rows` is a tuning/test override (must be a multiple of 8 or >= rows).
    """
    B, C, X, Y = target.shape
    denom = float(B * X * Y)
    in_itemsize = jnp.dtype(target.dtype).itemsize

    total_bytes = (target.size * in_itemsize
                   + logit.size * jnp.dtype(logit.dtype).itemsize
                   + weight.size * jnp.dtype(weight.dtype).itemsize)
    if not force_pallas and total_bytes < min_pallas_bytes:
        # Tiny problems: a fused XLA reduction beats launch + partials round trip.
        return weight_mse_ref(target, logit, weight)

    # K-reduce weight once in the wrapper: no lane-padded K axis in the kernel.
    w = jnp.sum(weight, axis=-1, dtype=jnp.float32)          # (B, X, Y)

    if Y % 128 == 0:
        # Native 4-D layout: zero relayout copies, C on a non-padded axis.
        t, l = target, logit
        rows_total, lanes = X, Y
    else:
        # Unaligned Y: flatten the spatial axes into a lane-dense (rows, 128)
        # layout.  Costs a relayout copy of t/l, but the native (…, Y) layout
        # would waste (128 - Y) / 128 of HBM bandwidth on every row.
        n = X * Y
        lanes = 128
        rows_total = -(-n // lanes)
        pad = rows_total * lanes - n
        t = target.reshape(B, C, n)
        l = logit.reshape(B, C, n)
        w = w.reshape(B, n)
        if pad:
            # Zero padding is exact: diff = 0 and wsum = 0 in the padded region.
            t = jnp.pad(t, ((0, 0), (0, 0), (0, pad)))
            l = jnp.pad(l, ((0, 0), (0, 0), (0, pad)))
            w = jnp.pad(w, ((0, 0), (0, pad)))
        t = t.reshape(B, C, rows_total, lanes)
        l = l.reshape(B, C, rows_total, lanes)
        w = w.reshape(B, rows_total, lanes)

    # Generation-aware VMEM budget (v7x: 64 MiB/TC -> 32 MiB; v5e/v6e: 48 MiB).
    vmem_cap = _vmem_capacity_bytes()
    tile_budget = min(vmem_cap // 2, 48 * 1024 * 1024)

    if tile_rows is None:
        tile_rows = _choose_tile_rows(rows_total, C, lanes, in_itemsize, tile_budget)
    if tile_rows is None:
        # Minimum tile does not fit the VMEM budget (pathological C): fall back.
        return weight_mse_ref(target, logit, weight)
    tile_rows = min(int(tile_rows), rows_total)

    num_tiles = pl.cdiv(rows_total, tile_rows)
    has_tail = (rows_total % tile_rows) != 0
    valid_tail_rows = rows_total - (num_tiles - 1) * tile_rows

    working_set = (_per_row_vmem_bytes(C, lanes, in_itemsize) * tile_rows
                   + 2 * 8 * 128 * 4)
    vmem_limit = int(min(max(working_set + 4 * 1024 * 1024, 16 * 1024 * 1024),
                         vmem_cap - 8 * 1024 * 1024))

    kernel = functools.partial(_weight_mse_kernel,
                               valid_tail_rows=valid_tail_rows,
                               has_tail=has_tail)

    # Scheduler hint only (kernel-visible traffic; wrapper K-reduce / relayout
    # copies, if any, are separate XLA ops).
    bytes_accessed = int(2 * B * C * rows_total * lanes * in_itemsize
                         + B * rows_total * lanes * 4
                         + B * num_tiles * 8 * 128 * 4)
    cost = pl.CostEstimate(flops=int(B * rows_total * lanes * (3 * C + 2)),
                           transcendentals=0,
                           bytes_accessed=bytes_accessed)

    partials = pl.pallas_call(
        kernel,
        out_shape=jax.ShapeDtypeStruct((B * 8, num_tiles * 128), jnp.float32),
        grid_spec=pltpu.PrefetchScalarGridSpec(
            num_scalar_prefetch=0,
            grid=(B, num_tiles),
            in_specs=[
                pl.BlockSpec((1, C, tile_rows, lanes), lambda b, r: (b, 0, r, 0)),
                pl.BlockSpec((1, C, tile_rows, lanes), lambda b, r: (b, 0, r, 0)),
                pl.BlockSpec((1, tile_rows, lanes), lambda b, r: (b, r, 0)),
            ],
            out_specs=pl.BlockSpec((8, 128), lambda b, r: (b, r)),
        ),
        compiler_params=pltpu.CompilerParams(
            dimension_semantics=("parallel", "parallel"),
            vmem_limit_bytes=vmem_limit,
        ),
        cost_estimate=cost,
    )(t, l, w)

    # Tiny final reduction + sqrt in XLA (tree reduce over per-block partials).
    return jnp.sqrt(jnp.sum(partials) / denom)


if __name__ == "__main__":
    key = jax.random.PRNGKey(0)
    k1, k2, k3, k4, k5, k6 = jax.random.split(key, 6)

    # Case 1: nominal small shape (Y not 128-aligned -> flattened lane-dense path).
    B, C, X, Y, K = 2, 4, 16, 16, 4
    target = jax.random.normal(k1, (B, C, X, Y), dtype=jnp.float32)
    logit = jax.random.normal(k2, (B, C, X, Y), dtype=jnp.float32)
    weight = jax.random.uniform(k3, (B, X, Y, K), dtype=jnp.float32)  # non-negative

    out = jax.block_until_ready(weight_mse(target, logit, weight, force_pallas=True))
    ref = weight_mse_ref(target, logit, weight)
    assert jnp.allclose(out, ref, rtol=1e-5, atol=1e-5), (out, ref)

    # Case 2: native 4-D path with a masked tail tile (X=40 tiled by 16 -> tail of 8).
    B2, C2, X2, Y2, K2 = 1, 3, 40, 128, 4
    target2 = jax.random.normal(k4, (B2, C2, X2, Y2), dtype=jnp.float32)
    logit2 = jax.random.normal(k5, (B2, C2, X2, Y2), dtype=jnp.float32)
    weight2 = jax.random.uniform(k6, (B2, X2, Y2, K2), dtype=jnp.float32)

    out2 = jax.block_until_ready(
        weight_mse(target2, logit2, weight2, force_pallas=True, tile_rows=16))
    ref2 = weight_mse_ref(target2, logit2, weight2)
    assert jnp.allclose(out2, ref2, rtol=1e-5, atol=1e-5), (out2, ref2)

    print("KERNEL_OK")
</pallas_src>

<mosaic_0001>
module attributes {stable_mosaic.version = 11 : i64} {
  func.func @_weight_mse_kernel(%arg0: i32, %arg1: i32, %arg2: memref<1x4x2x128xf32, #tpu.memory_space<vmem>>, %arg3: memref<1x4x2x128xf32, #tpu.memory_space<vmem>>, %arg4: memref<1x2x128xf32, #tpu.memory_space<vmem>>, %arg5: memref<8x128xf32, #tpu.memory_space<vmem>>) attributes {dimension_semantics = [#tpu.dimension_semantics<parallel>, #tpu.dimension_semantics<parallel>], iteration_bounds = array<i64: 2, 1>, scalar_prefetch = 0 : i64, scratch_operands = 0 : i64, tpu.core_type = #tpu.core_type<tc>, window_params = [{transform_indices = @transform_0, window_bounds = array<i64: 1, 4, 2, 128>}, {transform_indices = @transform_1, window_bounds = array<i64: 1, 4, 2, 128>}, {transform_indices = @transform_2, window_bounds = array<i64: 1, 2, 128>}, {transform_indices = @transform_3, window_bounds = array<i64: 8, 128>}]} {
    %c0 = arith.constant 0 : index
    %c0_0 = arith.constant 0 : index
    %c0_1 = arith.constant 0 : index
    %c0_2 = arith.constant 0 : index
    %0 = vector.load %arg2[%c0, %c0_0, %c0_1, %c0_2] : memref<1x4x2x128xf32, #tpu.memory_space<vmem>>, vector<1x4x2x128xf32>
    %1 = vector.shape_cast %0 : vector<1x4x2x128xf32> to vector<4x2x128xf32>
    %c0_3 = arith.constant 0 : index
    %c0_4 = arith.constant 0 : index
    %c0_5 = arith.constant 0 : index
    %c0_6 = arith.constant 0 : index
    %2 = vector.load %arg3[%c0_3, %c0_4, %c0_5, %c0_6] : memref<1x4x2x128xf32, #tpu.memory_space<vmem>>, vector<1x4x2x128xf32>
    %3 = vector.shape_cast %2 : vector<1x4x2x128xf32> to vector<4x2x128xf32>
    %4 = arith.subf %1, %3 : vector<4x2x128xf32>
    %5 = arith.mulf %4, %4 : vector<4x2x128xf32>
    %cst = arith.constant dense<0.000000e+00> : vector<2x128xf32>
    %6 = vector.multi_reduction <add>, %5, %cst [0] : vector<4x2x128xf32> to vector<2x128xf32>
    %c0_7 = arith.constant 0 : index
    %c0_8 = arith.constant 0 : index
    %c0_9 = arith.constant 0 : index
    %7 = vector.load %arg4[%c0_7, %c0_8, %c0_9] : memref<1x2x128xf32, #tpu.memory_space<vmem>>, vector<1x2x128xf32>
    %8 = vector.shape_cast %7 : vector<1x2x128xf32> to vector<2x128xf32>
    %9 = arith.mulf %6, %8 : vector<2x128xf32>
    %10 = vector.shape_cast %9 : vector<2x128xf32> to vector<1x2x128xf32>
    %cst_10 = arith.constant dense<0.000000e+00> : vector<1xf32>
    %11 = vector.multi_reduction <add>, %10, %cst_10 [1, 2] : vector<1x2x128xf32> to vector<1xf32>
    %12 = vector.shape_cast %11 : vector<1xf32> to vector<1x1x1xf32>
    %13 = vector.extract %12[0, 0, 0] : f32 from vector<1x1x1xf32>
    %14 = tpu.iota {dimensions = array<i32: 0>} : vector<8x128xi32>
    %15 = tpu.iota {dimensions = array<i32: 1>} : vector<8x128xi32>
    %c0_i32 = arith.constant 0 : i32
    %16 = vector.broadcast %c0_i32 : i32 to vector<8x128xi32>
    %17 = arith.cmpi eq, %14, %16 : vector<8x128xi32>
    %c0_i32_11 = arith.constant 0 : i32
    %18 = vector.broadcast %c0_i32_11 : i32 to vector<8x128xi32>
    %19 = arith.cmpi eq, %15, %18 : vector<8x128xi32>
    %20 = arith.andi %17, %19 : vector<8x128xi1>
    %cst_12 = arith.constant 0.000000e+00 : f32
    %21 = vector.broadcast %13 : f32 to vector<8x128xf32>
    %22 = vector.broadcast %cst_12 : f32 to vector<8x128xf32>
    %23 = arith.select %20, %21, %22 : vector<8x128xi1>, vector<8x128xf32>
    %c0_13 = arith.constant 0 : index
    %c0_14 = arith.constant 0 : index
    %24 = vector.load %arg5[%c0_13, %c0_14] : memref<8x128xf32, #tpu.memory_space<vmem>>, vector<8x128xf32>
    tpu.vector_store %arg5[%c0_13, %c0_14], %23 {strides = array<i32>} : memref<8x128xf32, #tpu.memory_space<vmem>>, vector<8x128xf32>,
    return
  }
  func.func @transform_0(%arg0: i32, %arg1: i32) -> (i32, i32, i32, i32) {
    %c0_i32 = arith.constant 0 : i32
    %c0_i32_0 = arith.constant 0 : i32
    %c0_i32_1 = arith.constant 0 : i32
    return %arg0, %c0_i32, %arg1, %c0_i32_0 : i32, i32, i32, i32
  }
  func.func @transform_1(%arg0: i32, %arg1: i32) -> (i32, i32, i32, i32) {
    %c0_i32 = arith.constant 0 : i32
    %c0_i32_0 = arith.constant 0 : i32
    %c0_i32_1 = arith.constant 0 : i32
    return %arg0, %c0_i32, %arg1, %c0_i32_0 : i32, i32, i32, i32
  }
  func.func @transform_2(%arg0: i32, %arg1: i32) -> (i32, i32, i32) {
    %c0_i32 = arith.constant 0 : i32
    %c0_i32_0 = arith.constant 0 : i32
    return %arg0, %arg1, %c0_i32 : i32, i32, i32
  }
  func.func @transform_3(%arg0: i32, %arg1: i32) -> (i32, i32) {
    %c0_i32 = arith.constant 0 : i32
    return %arg0, %arg1 : i32, i32
  }
}

</mosaic_0001>

<bundles_post_ra>
// kernel: tpu_custom_call.1
= control target key start
LH: loop header
LB: loop body
LE: loop exit
PB: predicated region body
PF: predicated region fallthrough
CT: control target
= control target key end

     0   :  { %s950_s0 = inlined_call_operand.hbm [shape: f32[2,4,2,128], index: 0, kind: input, shape index: {}]   ;;  %s951_s1 = inlined_call_operand.hbm [shape: f32[2,4,2,128], index: 1, kind: input, shape index: {}]   ;;  %s952_s2 = inlined_call_operand.hbm [shape: f32[2,2,128], index: 2, kind: input, shape index: {}]   ;;  %s953_s3 = inlined_call_operand.hbm [shape: f32[16,128], index: 3, kind: output, shape index: {}]  }
   0x1   :  { %962 = sst [smem:[#allocation19_spill]] %s951_s1 }
   0x2   :  { %8 = vsyncpa [#allocation3], 0 }
   0x3   :  { %10 = vsyncpa [#allocation3 + $0x1], 0 }
   0x4   :  { %11 = vsyncpa [#allocation6], 0 }
   0x5   :  { %13 = vsyncpa [#allocation6 + $0x1], 0 }
   0x6   :  { %14 = vsyncpa [#allocation4], 0 }
   0x7   :  { %16 = vsyncpa [#allocation4 + $0x1], 0  ;;  %s781_s12 = smov 0   ;;  %s783_s13 = smov 0  }
   0x8   :  { %s785_s14 = smov 0   ;;  %s787_s15 = smov 0  }
   0x9   :  { %s789_s16 = smov 0   ;;  %s791_s17 = smov 0  }
   0xa LB: > { %963 = sst [smem:[#allocation12_spill]] %s737_s12  ;;  %s812_s18 = sadd.s32 4294967295, %s757_s17   ;;  %s757_s17 = sphi %s791_s17, %s22_s17   ;;  %s753_s16 = sphi %s789_s16, %s987_s16   ;;  %s749_s15 = sphi %s787_s15, %s986_s15   ;;  %s745_s14 = sphi %s785_s14, %s982_s14   ;;  %s741_s13 = sphi %s783_s13, %s985_s13   ;;  %s737_s12 = sphi %s781_s12, %s984_s12  }
   0xb   : > { %964 = sst [smem:[#allocation13_spill]] %s745_s14  ;;  %s483_s19 = sadd.s32 4294967294, %s757_s17  }
   0xc   : > { %965 = sst [smem:[#allocation14_spill]] %s757_s17  ;;  %s34_s20 = sadd.s32 1, %s753_s16 }
   0xd   : > { %s43_s21 = sadd.s32 1, %s745_s14  ;;  %p36_p0 = scmp.ge.s32.totalorder %s34_s20, 2 }
   0xe   : > { %p50_p1 = scmp.ne.s32.totalorder %s745_s14, %s741_s13  ;;  %p51_p2 = scmp.eq.s32.totalorder %s757_s17, 0 }
   0xf   : > { %p56_p3 = scmp.ne.s32.totalorder %s741_s13, %s737_s12  ;;  %s989_s20 = smov (%p36_p0, %s34_s20), 0 }
  0x10   : > { %966 = sst [smem:[#allocation15_spill]] %s989_s20  ;;  %p824_p4 = por %p51_p2, %p50_p1 }
  0x11   : > { %p57_p5 = scmp.eq.s32.totalorder %s812_s18, 0  ;;  %s38_s23 = ssub.s32 %s753_s16, %s989_s20 }
  0x12   : > { %p138_p6 = scmp.eq.s32.totalorder %s812_s18, 1  ;;  %p41_p7 = scmp.eq.s32.totalorder %s38_s23, 0 }
  0x13   : > { %p832_p8 = por %p57_p5, %p56_p3  ;;  %p144_p10 = scmp.eq.s32.totalorder %s483_s19, 1 }
  0x14   : > { %p836_p9 = por %p138_p6, %p50_p1  ;;  %p485_p12 = scmp.ge.s32.totalorder %s757_s17, 2 }
  0x15   : > { %s841_s26 = scalar_select %p41_p7, %s745_s14, %s43_s21  }
  0x16   : > { %s969_s25 = scalar_select %p836_p9, 1, 0 }
  0x17   : > { %971 = sst [smem:[#allocation17_spill]] %s841_s26  ;;  %p843_p11 = por %p144_p10, %p56_p3 }
  0x18   : > { %970 = sst [smem:[#allocation16_spill]] %s969_s25  ;;  %p529_p13 = scmp.lt.s32.totalorder %s757_s17, 2 }
  0x19   : > { %s972_s27 = scalar_select %p843_p11, 1, 0 }
  0x1a   : > { %s850_s28 = sand.u32 1, %s745_s14   ;;  %s503_s30 = sshll.u32 %s753_s16, 3 }
  0x1b   : > { %973 = sst [smem:[#allocation18_spill]] %s972_s27  ;;  %s486_s29 = sshll.u32 %s850_s28, 3 }
  0x1c   : > { %p856_p0 = pnand %p529_p13, %p824_p4  ;;  %s187_s5 = sand.u32 1, %s757_s17  }
  0x1d   : > { %s975_s1 = sld [smem:[#allocation19_spill]]  ;;  %s191_s10 = scalar_lea.vmem [#allocation5], %s486_s29 }
  0x1e   : > { %s200_s11 = sshll.u32 %s191_s10, 4  ;;  %s188_s19 = scalar_lea.sflag [#allocation6], %s187_s5  ;;  %s201_s11 = int_to_ptr.vmem [resolvable:$true] %s200_s11 }
  0x1f   : > { %s759_s21 = smov 32   ;;  %s760_s22 = smov 2  }
  0x20   : > { %p494_p1 = scmp.ge.s32.totalorder %s757_s17, 1  ;;  %p228_p2 = scmp.lt.s32.totalorder %s757_s17, 3 }
  0x21   : > { %s165_s5 = scalar_lea.sflag [#allocation3], %s850_s28 }
  0x22   : > { %p868_p3 = pnand %p494_p1, %p228_p2 }
  0x23   : > { %s197_s8 = scalar_lea.hbm %s975_s1, %s503_s30  ;;  %s168_s1 = scalar_lea.vmem [#allocation2], %s486_s29 }
  0x24   : > { %s198_s9 = sshll.u32 %s197_s8, 4  ;;  %s174_s8 = scalar_lea.hbm %s950_s0, %s503_s30  ;;  %s199_s9 = int_to_ptr.hbm [resolvable:$true] %s198_s9 }
  0x25   : > { %521 = dma.hbm_to_vmem [thread:$0]  (!%p856_p0), %s199_s9, 128, %s201_s11, %s188_s19, %s759_s21, %s759_s21, %s760_s22  }
  0x26   : > { %s175_s10 = sshll.u32 %s174_s8, 4  ;;  %s177_s20 = sshll.u32 %s168_s1, 4  ;;  %s176_s10 = int_to_ptr.hbm [resolvable:$true] %s175_s10  ;;  %s178_s20 = int_to_ptr.vmem [resolvable:$true] %s177_s20 }
  0x27   : > { %518 = dma.hbm_to_vmem [thread:$0]  (!%p856_p0), %s176_s10, 128, %s178_s20, %s165_s5, %s759_s21, %s759_s21, %s760_s22  }
  0x28   : > { %s492_s9 = sshll.u32 %s850_s28, 1  ;;  %s493_s11 = sshll.u32 %s753_s16, 1 }
  0x29   : > { %s219_s17 = scalar_lea.hbm %s952_s2, %s493_s11  ;;  %s214_s12 = scalar_lea.vmem [#allocation7], %s492_s9 }
  0x2a   : > { %s221_s27 = sshll.u32 %s219_s17, 4  ;;  %s223_s25 = sshll.u32 %s214_s12, 4  ;;  %s222_s27 = int_to_ptr.hbm [resolvable:$true] %s221_s27  ;;  %s224_s25 = int_to_ptr.vmem [resolvable:$true] %s223_s25 }
  0x2b   : > { %524 = dma.hbm_to_vmem [thread:$0]  (!%p856_p0), %s222_s27, 32, %s224_s25, %s188_s19  }
  0x2c   : > { %232 = sbr.rel (%p868_p3) target bundleno = 253 (0xfd), region = 32  ;;  %s888_s1 = sand.u32 (!%p868_p3), 1, %s741_s13  }
  0x2d   : > { %s891_s20 = sshll.u32 (!%p868_p3), %s888_s1, 3  ;;  %s235_s14 = scalar_lea.sflag (!%p868_p3), [#allocation3], %s888_s1 }
  0x2e   : > { %s238_s17 = scalar_lea.vmem (!%p868_p3), [#allocation2], %s891_s20 }
  0x31   : > { %724 = dma.done.wait (%p832_p8), %s235_s14, 128  }
  0x32   : > { %726 = vsyncadd (%p832_p8), %s235_s14, 4294967168  ;;  %s244_s12 = sand.u32 1, %s812_s18   ;;  %s248_s26 = scalar_lea.vmem [#allocation5], %s891_s20 }
  0x33   : > { %s245_s25 = scalar_lea.sflag [#allocation6], %s244_s12 }
  0x34   : > { %728 = dma.done.wait (%p832_p8), %s245_s25, 160  }
  0x35   : > { %730 = vsyncadd (%p832_p8), %s245_s25, 4294967136  ;;  %v292_v0 = vld [vmem:[%s238_s17] sm:$0x3]  ;;  %v293_v1 = vld [vmem:[%s238_s17 + $0x2] sm:$0x3]  ;;  %vm308_vm0 = vcmask 1041408   ;;  %v328_v33 = vlaneseq }
  0x36   : > { %v294_v2 = vld [vmem:[%s238_s17 + $0x4] sm:$0x3]  ;;  %v295_v3 = vld [vmem:[%s238_s17 + $0x6] sm:$0x3]  ;;  %v296_v4 = vld [vmem:[%s248_s26] sm:$0x3] }
  0x37   : > { %v297_v5 = vld [vmem:[%s248_s26 + $0x2] sm:$0x3]  ;;  %v298_v6 = vld [vmem:[%s248_s26 + $0x4] sm:$0x3]  ;;  %v299_v7 = vld [vmem:[%s248_s26 + $0x6] sm:$0x3]  ;;  %v300_v8 = vsub.f32 %v292_v0, %v296_v4 }
  0x38   : > { %v301_v9 = vsub.f32 %v293_v1, %v297_v5  ;;  %v302_v10 = vsub.f32 %v294_v2, %v298_v6  ;;  %v303_v11 = vsub.f32 %v295_v3, %v299_v7  ;;  %s497_s18 = sshll.u32 %s888_s1, 1  ;;  %v329_v34 = vshrl.u32 %v328_v33, 7  ;;  %s500_s27 = sshll.u32 %s749_s15, 3 }
  0x39   : > { %v304_v12 = vmul.f32 %v300_v8, %v300_v8  ;;  %s258_s24 = scalar_lea.vmem [#allocation7], %s497_s18  ;;  %v331_v35 = vand.u32 127, %v328_v33  ;;  %s350_s30 = scalar_lea.hbm %s953_s3, %s500_s27 }
  0x3a   : > { %v305_v13 = vmul.f32 %v301_v9, %v301_v9  ;;  %v306_v14 = vmul.f32 %v302_v10, %v302_v10  ;;  %v307_v15 = vmul.f32 %v303_v11, %v303_v11  ;;  %v316_v22 = vld [vmem:[%s258_s24] sm:$0x3]  ;;  %vm332_vm1 = vcmp.eq.s32.totalorder %v329_v34, 0  ;;  %s291_s19 = scalar_lea.vmem [#allocation8], %s891_s20  ;;  %s354_s22 = sshll.u32 %s350_s30, 4  ;;  %s355_s22 = int_to_ptr.hbm [resolvable:$true] %s354_s22 }
  0x3b   : > { %v309_v16 = vsel %vm308_vm0, %v304_v12, 0.0  ;;  %vm333_vm2 = vcmp.eq.s32.totalorder %v331_v35, 0  ;;  %s352_s21 = sshll.u32 %s291_s19, 4  ;;  %s339_s6 = scalar_lea.sflag [#allocation4], %s888_s1  ;;  %s353_s21 = int_to_ptr.vmem [resolvable:$true] %s352_s21 }
  0x3c   : > { %v310_v17 = vsel %vm308_vm0, %v305_v13, 0.0  ;;  %v312_v19 = vsel %vm308_vm0, %v306_v14, 0.0  ;;  %v314_v20 = vsel %vm308_vm0, %v307_v15, 0.0  ;;  %vm334_vm3 = vmand %vm332_vm1, %vm333_vm2  ;;  %s685_s7 = sshra.s32 %s355_s22, 4  ;;  %s691_s5 = scalar_lea.hbm %s953_s3, 16  ;;  %s686_s7 = int_to_ptr.hbm [resolvable:$true] %s685_s7 }
  0x3d   : > { %v311_v18 = vadd.f32 %v310_v17, %v309_v16  ;;  %s687_s15 = scalar_lea.hbm %s686_s7, 8  ;;  %p692_p7 = scmp.lt.s32.totalorder %s686_s7, %s953_s3 }
  0x3e   : > { %p688_p4 = scmp.ne.s32.totalorder %s686_s7, %s687_s15  ;;  %p693_p8 = scmp.lt.s32.totalorder %s691_s5, %s687_s15 }
  0x3f   : > { %v313_v21 = vadd.f32 %v312_v19, %v311_v18 }
  0x40   : > { %p689_p5 = pnand %p688_p4, %p836_p9  ;;  %p694_p10 = por %p693_p8, %p692_p7 }
  0x41   : > { %v315_v23 = vadd.f32 %v314_v20, %v313_v21 }
  0x42   : > { %p690_p6 = pneg %p689_p5 }
  0x43   : > { %v317_v24 = vmul.f32 %v316_v22, %v315_v23 }
  0x44   : > { %p695_p13 = pnand %p694_p10, %p690_p6 }
  0x45   : > { %v318_v25 = vsel %vm308_vm0, %v317_v24, 0.0 }
  0x46   : > { %319 = vadd.xlane.f32.xlu0 %v318_v25 }
  0xb9   : > { %v320_v26 = vpop.xlane.xlu0 %319 }
  0xba   : > { %v321_v27 = vrot.slane %v320_v26, 4 }
  0xbc   : > { %v322_v28 = vadd.f32 %v321_v27, %v320_v26 }
  0xbe   : > { %v323_v29 = vrot.slane %v322_v28, 2 }
  0xc0   : > { %v324_v30 = vadd.f32 %v323_v29, %v322_v28 }
  0xc2   : > { %v325_v31 = vrot.slane %v324_v30, 1 }
  0xc4   : > { %v326_v32 = vadd.f32 %v325_v31, %v324_v30 }
  0xc6   : > { %505 = vpush %v326_v32 }
  0xf7   : > { %s506_s23 = spop %505 }
  0xf8   : > { %v335_v36 = vstv %s506_s23 }
  0xf9   : > { %v336_v37 = vsel %vm334_vm3, %v335_v36, 0.0 }
  0xfa   : > { %337 = vst [vmem:[%s291_s19] sm:$0xff] %v336_v37 }
  0xfb   : > { %698 = shalt.err (!%p695_p13)
}
  0xfc   : > { %513 = dma.vmem_to_hbm [thread:$0]  (%p836_p9), %s353_s21, 128, %s355_s22, %s339_s6  }
  0xfd PF: > { %s978_s1 = sld [smem:[#allocation12_spill]]  ;;  %p526_p0 = pnand %p485_p12, %p843_p11 }
  0xfe   : > { %s980_s14 = sld [smem:[#allocation14_spill]] }
  0xff   : > { %p527_p1 = pneg %p526_p0 }
 0x103   : > { %s366_s17 = sand.u32 1, %s978_s1  }
 0x104   : > { %s367_s12 = scalar_lea.sflag [#allocation4], %s366_s17 }
 0x105   : > { %732 = dma.done.wait (%p527_p1), %s367_s12, 128  }
 0x106   : > { %734 = vsyncadd (%p527_p1), %s367_s12, 4294967168  ;;  %s22_s17 = sadd.s32 1, %s980_s14   ;;  %s981_s25 = sld [smem:[#allocation13_spill]] }
 0x107   : > { %p19_p2 = scmp.ge.s32.totalorder %s22_s17, 4   ;;  %s982_s14 = sld [smem:[#allocation17_spill]] }
 0x108   : > { %s983_s26 = sld [smem:[#allocation15_spill]]  ;;  %s984_s12 = smov %s741_s13 }
 0x109   : > { %s986_s15 = smov %s753_s16 }
 0x10a   :  { %21 = sbr.rel (!%p19_p2) target bundleno = 10 (0xa), region = 101 }
 0x10c   : > { %s985_s13 = smov %s981_s25 }
 0x10e   : > { %s987_s16 = smov %s983_s26 }
 0x10f   :  { %373 = vsyncpa [#allocation3], 1 }
 0x110   :  { %375 = vsyncpa [#allocation3 + $0x1], 1 }
 0x111   :  { %376 = vsyncpa [#allocation6], 1 }
 0x112   :  { %378 = vsyncpa [#allocation6 + $0x1], 1 }
 0x113   :  { %379 = vsyncpa [#allocation4], 1 }
 0x114   :  { %381 = vsyncpa [#allocation4 + $0x1], 1 }

</bundles_post_ra>
